<compile_context>
chip_gen: v5e
topology: v5e:2x2
jax: 0.10.0
libtpu: 0.0.40
codegen_flags: <defaults>
</compile_context>

<pallas_src>
import functools

import jax
import jax.numpy as jnp
from jax.experimental import pallas as pl
from jax.experimental.pallas import tpu as pltpu


def _pick_spatial_tile(hw, cin, cout, budget_bytes=8 << 20):
    """Largest spatial tile (multiple of 128) that divides hw and whose
    double-buffered f32 blocks (cond + x + out) stay within budget_bytes.
    Falls back to the full spatial extent (always legal) otherwise."""
    if hw % 128 != 0:
        return hw
    per_elem = 4 * (cin + 2 * cout) * 2          # f32, in/x/out, 2 buffers each
    cap = max(128, (budget_bytes // per_elem) // 128 * 128)
    t = min(cap, hw)
    while t > 128 and hw % t != 0:
        t -= 128
    return t


def _sft_kernel(cond_ref, x_ref, w0_ref, b0_ref, w1_ref, b1_ref, out_ref, *,
                cout):
    # cond_ref : (1, Cin,  T)   current (batch, spatial-tile) block of cond
    # x_ref    : (1, Cout, T)   matching block of x
    # w0_ref   : (2*nf, Cin)    stacked [scale_conv0; shift_conv0] weights
    # b0_ref   : (2*nf, 1)      stacked conv0 biases (broadcast along lanes)
    # w1_ref   : (2*Cout, 2*nf) block-diag(scale_conv1, shift_conv1) weights
    # b1_ref   : (2*Cout, 1)    stacked conv1 biases
    # out_ref  : (1, Cout, T)
    c = cond_ref[0]                                   # (Cin, T)
    xv = x_ref[0]                                     # (Cout, T)

    # ---- fused conv0 (both branches) + leaky_relu(0.1) ----
    h = jnp.dot(w0_ref[...], c, preferred_element_type=jnp.float32) + b0_ref[...]
    h = jnp.where(h >= 0.0, h, 0.1 * h)               # (2*nf, T)

    # ---- fused conv1 (block-diagonal): rows [:Cout]=scale, [Cout:]=shift ----
    r = jnp.dot(w1_ref[...], h, preferred_element_type=jnp.float32) + b1_ref[...]
    scale = r[:cout]                                  # (Cout, T)
    shift = r[cout:]                                  # (Cout, T)

    # ---- SFT modulation ----
    out_ref[0] = (xv * (scale + 1.0) + shift).astype(out_ref.dtype)


def sft_layer(x, cond, ws0, bs0, ws1, bs1, wh0, bh0, wh1, bh1):
    """x: (B, out_nc, H, W); cond: (B, in_nc, H, W).
    ws0/wh0: (nf, in_nc, 1, 1), bs0/bh0: (nf,)
    ws1/wh1: (out_nc, nf, 1, 1), bs1/bh1: (out_nc,)
    Returns x * (scale + 1) + shift, matching the PyTorch SFTLayer."""
    B, Cout, H, W = x.shape
    _, Cin, _, _ = cond.shape
    nf = ws0.shape[0]
    HW = H * W

    T = _pick_spatial_tile(HW, Cin, Cout)
    grid = (B, HW // T)

    cond_f = cond.reshape(B, Cin, HW)
    x_f = x.reshape(B, Cout, HW)

    f32 = jnp.float32
    # Fused conv0 weights / biases: stack scale & shift branches along rows.
    w0 = jnp.concatenate([ws0.reshape(nf, Cin), wh0.reshape(nf, Cin)],
                         axis=0).astype(f32)                      # (2nf, Cin)
    b0 = jnp.concatenate([bs0, bh0]).reshape(2 * nf, 1).astype(f32)
    # Fused conv1 weights: block-diagonal so one matmul yields [scale; shift].
    w1 = jnp.zeros((2 * Cout, 2 * nf), f32)
    w1 = w1.at[:Cout, :nf].set(ws1.reshape(Cout, nf).astype(f32))
    w1 = w1.at[Cout:, nf:].set(wh1.reshape(Cout, nf).astype(f32))
    b1 = jnp.concatenate([bs1, bh1]).reshape(2 * Cout, 1).astype(f32)

    const = lambda b, t: (0, 0)   # weights/biases: same block every step

    kernel = functools.partial(_sft_kernel, cout=Cout)

    out = pl.pallas_call(
        kernel,
        out_shape=jax.ShapeDtypeStruct((B, Cout, HW), x.dtype),
        grid_spec=pltpu.PrefetchScalarGridSpec(
            num_scalar_prefetch=0,
            grid=grid,
            in_specs=[
                pl.BlockSpec((1, Cin, T), lambda b, t: (b, 0, t)),
                pl.BlockSpec((1, Cout, T), lambda b, t: (b, 0, t)),
                pl.BlockSpec((2 * nf, Cin), const),
                pl.BlockSpec((2 * nf, 1), const),
                pl.BlockSpec((2 * Cout, 2 * nf), const),
                pl.BlockSpec((2 * Cout, 1), const),
            ],
            out_specs=pl.BlockSpec((1, Cout, T), lambda b, t: (b, 0, t)),
        ),
        compiler_params=pltpu.CompilerParams(
            # No reduction axis: both grid axes are independent, so both shard
            # across TensorCores on v7x.
            dimension_semantics=("parallel", "parallel")),
    )(cond_f, x_f, w0, b0, w1, b1)

    return out.reshape(B, Cout, H, W)


def sft_layer_ref(x, cond, ws0, bs0, ws1, bs1, wh0, bh0, wh1, bh1):
    """Pure-JAX reference (matches PyTorch SFTLayer.forward)."""
    def conv1x1(z, w, b):
        return jnp.einsum('oc,bchw->bohw', w[:, :, 0, 0], z) + b[None, :, None, None]

    def lrelu(a):
        return jnp.where(a >= 0.0, a, 0.1 * a)

    scale = conv1x1(lrelu(conv1x1(cond, ws0, bs0)), ws1, bs1)
    shift = conv1x1(lrelu(conv1x1(cond, wh0, bh0)), wh1, bh1)
    return x * (scale + 1.0) + shift


if __name__ == "__main__":
    key = jax.random.PRNGKey(0)
    B, in_nc, out_nc, nf = 2, 32, 64, 32
    H = W = 16

    keys = jax.random.split(key, 11)
    x = jax.random.normal(keys[0], (B, out_nc, H, W), dtype=jnp.float32)
    cond = jax.random.normal(keys[1], (B, in_nc, H, W), dtype=jnp.float32)

    # Deterministic synthetic conv weights/biases (1x1 convs with bias).
    ws0 = jax.random.normal(keys[2], (nf, in_nc, 1, 1), jnp.float32) * (2.0 / in_nc) ** 0.5
    bs0 = jax.random.normal(keys[3], (nf,), jnp.float32) * 0.1
    ws1 = jax.random.normal(keys[4], (out_nc, nf, 1, 1), jnp.float32) * (2.0 / nf) ** 0.5
    bs1 = jax.random.normal(keys[5], (out_nc,), jnp.float32) * 0.1
    wh0 = jax.random.normal(keys[6], (nf, in_nc, 1, 1), jnp.float32) * (2.0 / in_nc) ** 0.5
    bh0 = jax.random.normal(keys[7], (nf,), jnp.float32) * 0.1
    wh1 = jax.random.normal(keys[8], (out_nc, nf, 1, 1), jnp.float32) * (2.0 / nf) ** 0.5
    bh1 = jax.random.normal(keys[9], (out_nc,), jnp.float32) * 0.1

    out = sft_layer(x, cond, ws0, bs0, ws1, bs1, wh0, bh0, wh1, bh1)
    out = jax.block_until_ready(out)

    ref = sft_layer_ref(x, cond, ws0, bs0, ws1, bs1, wh0, bh0, wh1, bh1)
    assert out.shape == (B, out_nc, H, W)
    assert jnp.allclose(out, ref, atol=1e-4, rtol=1e-4)
    print("KERNEL_OK")
</pallas_src>

<mosaic_0001>
module attributes {stable_mosaic.version = 11 : i64} {
  func.func @_sft_kernel(%arg0: i32, %arg1: i32, %arg2: memref<1x32x256xf32, #tpu.memory_space<vmem>>, %arg3: memref<1x64x256xf32, #tpu.memory_space<vmem>>, %arg4: memref<64x32xf32, #tpu.memory_space<vmem>>, %arg5: memref<64x1xf32, #tpu.memory_space<vmem>>, %arg6: memref<128x64xf32, #tpu.memory_space<vmem>>, %arg7: memref<128x1xf32, #tpu.memory_space<vmem>>, %arg8: memref<1x64x256xf32, #tpu.memory_space<vmem>>) attributes {dimension_semantics = [#tpu.dimension_semantics<parallel>, #tpu.dimension_semantics<parallel>], iteration_bounds = array<i64: 2, 1>, scalar_prefetch = 0 : i64, scratch_operands = 0 : i64, tpu.core_type = #tpu.core_type<tc>, window_params = [{transform_indices = @transform_0, window_bounds = array<i64: 1, 32, 256>}, {transform_indices = @transform_1, window_bounds = array<i64: 1, 64, 256>}, {pipeline_mode = #tpu.pipeline_mode<synchronous>, transform_indices = @transform_2, window_bounds = array<i64: 64, 32>}, {pipeline_mode = #tpu.pipeline_mode<synchronous>, transform_indices = @transform_3, window_bounds = array<i64: 64, 1>}, {pipeline_mode = #tpu.pipeline_mode<synchronous>, transform_indices = @transform_4, window_bounds = array<i64: 128, 64>}, {pipeline_mode = #tpu.pipeline_mode<synchronous>, transform_indices = @transform_5, window_bounds = array<i64: 128, 1>}, {transform_indices = @transform_6, window_bounds = array<i64: 1, 64, 256>}]} {
    %c0 = arith.constant 0 : index
    %c0_0 = arith.constant 0 : index
    %c0_1 = arith.constant 0 : index
    %0 = vector.load %arg2[%c0, %c0_0, %c0_1] : memref<1x32x256xf32, #tpu.memory_space<vmem>>, vector<1x32x256xf32>
    %1 = vector.shape_cast %0 : vector<1x32x256xf32> to vector<32x256xf32>
    %c0_2 = arith.constant 0 : index
    %c0_3 = arith.constant 0 : index
    %c0_4 = arith.constant 0 : index
    %2 = vector.load %arg3[%c0_2, %c0_3, %c0_4] : memref<1x64x256xf32, #tpu.memory_space<vmem>>, vector<1x64x256xf32>
    %3 = vector.shape_cast %2 : vector<1x64x256xf32> to vector<64x256xf32>
    %c0_5 = arith.constant 0 : index
    %c0_6 = arith.constant 0 : index
    %4 = vector.load %arg4[%c0_5, %c0_6] : memref<64x32xf32, #tpu.memory_space<vmem>>, vector<64x32xf32>
    %cst = arith.constant dense<0.000000e+00> : vector<64x256xf32>
    %5 = tpu.matmul %4, %1, %cst {dimension_numbers = #tpu.dot_dimension_numbers<[1], [0], [0], [1], [0, 0, 1, 1], [], []>} : vector<64x32xf32>, vector<32x256xf32>, vector<64x256xf32> -> vector<64x256xf32>
    %c0_7 = arith.constant 0 : index
    %c0_8 = arith.constant 0 : index
    %6 = vector.load %arg5[%c0_7, %c0_8] : memref<64x1xf32, #tpu.memory_space<vmem>>, vector<64x1xf32>
    %7 = vector.broadcast %6 : vector<64x1xf32> to vector<64x256xf32>
    %8 = arith.addf %5, %7 : vector<64x256xf32>
    %cst_9 = arith.constant 0.000000e+00 : f32
    %9 = vector.broadcast %cst_9 : f32 to vector<64x256xf32>
    %10 = arith.cmpf oge, %8, %9 : vector<64x256xf32>
    %cst_10 = arith.constant 1.000000e-01 : f32
    %11 = vector.broadcast %cst_10 : f32 to vector<64x256xf32>
    %12 = arith.mulf %11, %8 : vector<64x256xf32>
    %13 = arith.select %10, %8, %12 : vector<64x256xi1>, vector<64x256xf32>
    %c0_11 = arith.constant 0 : index
    %c0_12 = arith.constant 0 : index
    %14 = vector.load %arg6[%c0_11, %c0_12] : memref<128x64xf32, #tpu.memory_space<vmem>>, vector<128x64xf32>
    %cst_13 = arith.constant dense<0.000000e+00> : vector<128x256xf32>
    %15 = tpu.matmul %14, %13, %cst_13 {dimension_numbers = #tpu.dot_dimension_numbers<[1], [0], [0], [1], [0, 0, 1, 1], [], []>} : vector<128x64xf32>, vector<64x256xf32>, vector<128x256xf32> -> vector<128x256xf32>
    %c0_14 = arith.constant 0 : index
    %c0_15 = arith.constant 0 : index
    %16 = vector.load %arg7[%c0_14, %c0_15] : memref<128x1xf32, #tpu.memory_space<vmem>>, vector<128x1xf32>
    %17 = vector.broadcast %16 : vector<128x1xf32> to vector<128x256xf32>
    %18 = arith.addf %15, %17 : vector<128x256xf32>
    %19 = vector.extract_strided_slice %18 {offsets = [0, 0], sizes = [64, 256], strides = [1, 1]} : vector<128x256xf32> to vector<64x256xf32>
    %20 = vector.extract_strided_slice %18 {offsets = [64, 0], sizes = [64, 256], strides = [1, 1]} : vector<128x256xf32> to vector<64x256xf32>
    %cst_16 = arith.constant 1.000000e+00 : f32
    %21 = vector.broadcast %cst_16 : f32 to vector<64x256xf32>
    %22 = arith.addf %19, %21 : vector<64x256xf32>
    %23 = arith.mulf %3, %22 : vector<64x256xf32>
    %24 = arith.addf %23, %20 : vector<64x256xf32>
    %c0_17 = arith.constant 0 : index
    %c0_18 = arith.constant 0 : index
    %c0_19 = arith.constant 0 : index
    %25 = vector.load %arg8[%c0_17, %c0_18, %c0_19] : memref<1x64x256xf32, #tpu.memory_space<vmem>>, vector<1x64x256xf32>
    %26 = vector.shape_cast %25 : vector<1x64x256xf32> to vector<64x256xf32>
    %27 = vector.shape_cast %24 : vector<64x256xf32> to vector<1x64x256xf32>
    tpu.vector_store %arg8[%c0_17, %c0_18, %c0_19], %27 {strides = array<i32>} : memref<1x64x256xf32, #tpu.memory_space<vmem>>, vector<1x64x256xf32>,
    return
  }
  func.func @transform_0(%arg0: i32, %arg1: i32) -> (i32, i32, i32) {
    %c0_i32 = arith.constant 0 : i32
    %c0_i32_0 = arith.constant 0 : i32
    return %arg0, %c0_i32, %arg1 : i32, i32, i32
  }
  func.func @transform_1(%arg0: i32, %arg1: i32) -> (i32, i32, i32) {
    %c0_i32 = arith.constant 0 : i32
    %c0_i32_0 = arith.constant 0 : i32
    return %arg0, %c0_i32, %arg1 : i32, i32, i32
  }
  func.func @transform_2(%arg0: i32, %arg1: i32) -> (i32, i32) {
    %c0_i32 = arith.constant 0 : i32
    %c0_i32_0 = arith.constant 0 : i32
    %c0_i32_1 = arith.constant 0 : i32
    return %c0_i32, %c0_i32_0 : i32, i32
  }
  func.func @transform_3(%arg0: i32, %arg1: i32) -> (i32, i32) {
    %c0_i32 = arith.constant 0 : i32
    %c0_i32_0 = arith.constant 0 : i32
    %c0_i32_1 = arith.constant 0 : i32
    return %c0_i32, %c0_i32_0 : i32, i32
  }
  func.func @transform_4(%arg0: i32, %arg1: i32) -> (i32, i32) {
    %c0_i32 = arith.constant 0 : i32
    %c0_i32_0 = arith.constant 0 : i32
    %c0_i32_1 = arith.constant 0 : i32
    return %c0_i32, %c0_i32_0 : i32, i32
  }
  func.func @transform_5(%arg0: i32, %arg1: i32) -> (i32, i32) {
    %c0_i32 = arith.constant 0 : i32
    %c0_i32_0 = arith.constant 0 : i32
    %c0_i32_1 = arith.constant 0 : i32
    return %c0_i32, %c0_i32_0 : i32, i32
  }
  func.func @transform_6(%arg0: i32, %arg1: i32) -> (i32, i32, i32) {
    %c0_i32 = arith.constant 0 : i32
    %c0_i32_0 = arith.constant 0 : i32
    return %arg0, %c0_i32, %arg1 : i32, i32, i32
  }
}

</mosaic_0001>

<bundles_post_ra>
// kernel: tpu_custom_call.1
= control target key start
LH: loop header
LB: loop body
LE: loop exit
PB: predicated region body
PF: predicated region fallthrough
CT: control target
= control target key end

     0   :  { %11 = vsyncpa [#allocation3], 0  ;;  %s1680_s0 = inlined_call_operand.vmem [shape: f32[2,32,256], index: 0, kind: input, shape index: {}]   ;;  %s1681_s1 = inlined_call_operand.vmem [shape: f32[2,64,256], index: 1, kind: input, shape index: {}]   ;;  %s1682_s2 = inlined_call_operand.vmem [shape: f32[64,32], index: 2, kind: input, shape index: {}]   ;;  %s1683_s3 = inlined_call_operand.vmem [shape: f32[64,1], index: 3, kind: input, shape index: {}]   ;;  %s1684_s4 = inlined_call_operand.vmem [shape: f32[128,64], index: 4, kind: input, shape index: {}]   ;;  %s1685_s5 = inlined_call_operand.vmem [shape: f32[128,1], index: 5, kind: input, shape index: {}]   ;;  %s1686_s6 = inlined_call_operand.hbm [shape: f32[2,64,256], index: 6, kind: output, shape index: {}]  }
   0x1   :  { %13 = vsyncpa [#allocation3 + $0x1], 0  ;;  %s1283_s21 = smov 0   ;;  %s1285_s22 = smov 0  }
   0x2   :  { %s1287_s23 = smov 0   ;;  %s1289_s24 = smov 0  }
   0x3   :  { %s1291_s25 = smov 0   ;;  %s1293_s26 = smov 0  }
   0x4 LB: > { %s1022_s27 = sadd.s32 4294967295, %s1243_s26   ;;  %s1023_s28 = sadd.s32 4294967294, %s1243_s26   ;;  %s1243_s26 = sphi %s1293_s26, %s19_s26   ;;  %s1239_s25 = sphi %s1291_s25, %s1693_s25   ;;  %s1235_s24 = sphi %s1289_s24, %s1692_s24   ;;  %s1231_s23 = sphi %s1287_s23, %s1691_s23   ;;  %s1227_s22 = sphi %s1285_s22, %s1690_s22   ;;  %s1223_s21 = sphi %s1283_s21, %s1689_s21  }
   0x5   : > { %s31_s29 = sadd.s32 1, %s1239_s25  ;;  %s180_s30 = sadd.s32 1, %s1231_s23 }
   0x6   : > { %p33_p0 = scmp.ge.s32.totalorder %s31_s29, 2  ;;  %p190_p1 = scmp.ne.s32.totalorder %s1231_s23, %s1227_s22 }
   0x7   : > { %p191_p2 = scmp.eq.s32.totalorder %s1022_s27, 1  ;;  %p196_p3 = scmp.ne.s32.totalorder %s1227_s22, %s1223_s21 }
   0x8   : > { %s1695_s29 = smov (%p33_p0, %s31_s29), 0  ;;  %p197_p5 = scmp.eq.s32.totalorder %s1023_s28, 1 }
   0x9   : > { %p1323_p4 = por %p191_p2, %p190_p1  ;;  %s175_s8 = ssub.s32 %s1239_s25, %s1695_s29 }
   0xa   : > { %p1026_p6 = scmp.ge.s32.totalorder %s1243_s26, 1  ;;  %p178_p7 = scmp.eq.s32.totalorder %s175_s8, 0 }
   0xb   : > { %p1330_p8 = por %p197_p5, %p196_p3  ;;  %p253_p9 = scmp.lt.s32.totalorder %s1243_s26, 3 }
   0xc   : > { %s1336_s10 = scalar_select %p178_p7, %s1231_s23, %s180_s30  }
   0xd   : > { %p254_p10 = pnand %p1026_p6, %p253_p9 }
   0xe   : > { %p297_p11 = scmp.lt.s32.totalorder (!%p254_p10), %s1235_s24, 1  ;;  %s293_s11 = sand.u32 (!%p254_p10), 1, %s1227_s22  }
   0xf   : > { %257 = sbr.rel (%p254_p10) target bundleno = 464 (0x1d0), region = 44  ;;  %s1087_s13 = sshll.u32 (!%p254_p10), %s1235_s24, 7 }
  0x10   : > { %s921_s17 = scalar_lea.hbm (!%p254_p10), %s1686_s6, %s1087_s13 }
  0x14   : > { %v354_v0 = vld [vmem:[%s1683_s3 + $0x28] sm:$0xff]  ;;  %v356_v1 = vld [vmem:[%s1683_s3 + $0x38] sm:$0xff]  ;;  %v1245_v2 = vmov 0   ;;  %s1346_s15 = scalar_select %p297_p11, %s1235_s24, 1  ;;  %v353_v7 = vld [vmem:[%s1683_s3 + $0x20] sm:$0xff]  ;;  %vm397_vm0 = vcmask 261120  }
  0x15   : > { %1163 = vset.pattern.permute.xlu1 %v1245_v2  ;;  %1162 = vset.pattern.permute.xlu0 %v1245_v2  ;;  %v355_v8 = vld [vmem:[%s1683_s3 + $0x30] sm:$0xff]  ;;  %v341_v13 = vld [vmem:[%s1682_s2] sm:$0xff]  ;;  %v352_v14 = vld [vmem:[%s1683_s3 + $0x18] sm:$0xff]  ;;  %s908_s24 = scalar_lea.sflag [#allocation3], %s293_s11 }
  0x16   : > { %384 = vperm.xlu1 %1163, %v354_v0   ;;  %394 = vperm.xlu0 %1162, %v356_v1   ;;  %s1085_s16 = sshll.u32 %s1346_s15, 6  ;;  %v349_v15 = vld [vmem:[%s1683_s3] sm:$0xff]  ;;  %v350_v16 = vld [vmem:[%s1683_s3 + $0x8] sm:$0xff]  ;;  %v351_v18 = vld [vmem:[%s1683_s3 + $0x10] sm:$0xff]  ;;  %s1086_s27 = sshll.u32 %s1346_s15, 7 }
  0x17   : > { %1164 = vset.pattern.permute.xlu2 %v1245_v2  ;;  %s304_s19 = scalar_lea.vmem %s1680_s0, %s1085_s16  ;;  %v342_v17 = vld [vmem:[%s1682_s2 + $0x8] sm:$0xff]  ;;  %v570_v20 = vld [vmem:[%s1685_s5 + $0x10] sm:$0xff]  ;;  %v568_v22 = vld [vmem:[%s1685_s5] sm:$0xff]  ;;  %s1578_s8 = scalar_lea.vmem %s1681_s1, %s1086_s27 }
  0x18   : > { %v323_v3 = vld [vmem:[%s304_s19 + $0x30] sm:$0xff]  ;;  %v324_v4 = vld [vmem:[%s304_s19 + $0x38] sm:$0xff]  ;;  %v321_v5 = vld [vmem:[%s304_s19 + $0x20] sm:$0xff]  ;;  %374 = vperm.xlu2 %1164, %v352_v14   ;;  %s1027_s15 = sshll.u32 %s293_s11, 7 }
  0x19   : > { %434 = vmatpush.msra.mxu0 %v323_v3  ;;  %475 = vmatpush.msra.mxu1 %v324_v4  ;;  %v322_v6 = vld [vmem:[%s304_s19 + $0x28] sm:$0xff]  ;;  %v319_v9 = vld [vmem:[%s304_s19 + $0x10] sm:$0xff]  ;;  %v320_v10 = vld [vmem:[%s304_s19 + $0x18] sm:$0xff]  ;;  %s1589_s12 = scalar_lea.vmem [#allocation2], %s1027_s15 }
  0x1a   : > { %v317_v11 = vld [vmem:[%s304_s19] sm:$0xff]  ;;  %v318_v12 = vld [vmem:[%s304_s19 + $0x8] sm:$0xff]  ;;  %v343_v21 = vld [vmem:[%s1682_s2 + $0x10] sm:$0xff]  ;;  %s922_s18 = sshll.u32 %s1589_s12, 4  ;;  %s924_s19 = sshll.u32 %s921_s17, 4  ;;  %s923_s18 = int_to_ptr.vmem [resolvable:$true] %s922_s18  ;;  %s925_s19 = int_to_ptr.hbm [resolvable:$true] %s924_s19 }
  0x1b   : > { %435 = vmatpush.msra.mxu0 %v321_v5  ;;  %476 = vmatpush.msra.mxu1 %v322_v6  ;;  %v569_v19 = vld [vmem:[%s1685_s5 + $0x8] sm:$0xff]  ;;  %v572_v23 = vld [vmem:[%s1685_s5 + $0x20] sm:$0xff]  ;;  %v344_v25 = vld [vmem:[%s1682_s2 + $0x18] sm:$0xff]  ;;  %s1179_s20 = sshra.s32 %s925_s19, 4  ;;  %s1180_s20 = int_to_ptr.hbm [resolvable:$true] %s1179_s20 }
  0x1c   : > { %v573_v24 = vld [vmem:[%s1685_s5 + $0x28] sm:$0xff]  ;;  %v571_v26 = vld [vmem:[%s1685_s5 + $0x18] sm:$0xff]  ;;  %v576_v28 = vld [vmem:[%s1685_s5 + $0x40] sm:$0xff]  ;;  %s1181_s27 = scalar_lea.hbm %s1180_s20, 128  ;;  %p1186_p1 = scmp.lt.s32.totalorder %s1180_s20, %s1686_s6 }
  0x1d   : > { %436 = vmatpush.msra.mxu0 %v319_v9  ;;  %477 = vmatpush.msra.mxu1 %v320_v10  ;;  %v575_v27 = vld [vmem:[%s1685_s5 + $0x38] sm:$0xff]  ;;  %v345_v29 = vld [vmem:[%s1682_s2 + $0x20] sm:$0xff]  ;;  %v574_v30 = vld [vmem:[%s1685_s5 + $0x30] sm:$0xff]  ;;  %p1182_p12 = scmp.ne.s32.totalorder %s1180_s20, %s1181_s27 }
  0x1e   : > { %379 = vperm.xlu1 %1163, %v353_v7   ;;  %389 = vperm.xlu0 %1162, %v355_v8   ;;  %v578_v31 = vld [vmem:[%s1685_s5 + $0x50] sm:$0xff]  ;;  %v579_v32 = vld [vmem:[%s1685_s5 + $0x58] sm:$0xff]  ;;  %v346_v33 = vld [vmem:[%s1682_s2 + $0x28] sm:$0xff] }
  0x1f   : > { %437 = vmatpush.msra.mxu0 %v317_v11  ;;  %478 = vmatpush.msra.mxu1 %v318_v12  ;;  %v577_v34 = vld [vmem:[%s1685_s5 + $0x48] sm:$0xff]  ;;  %v582_v36 = vld [vmem:[%s1685_s5 + $0x70] sm:$0xff]  ;;  %v580_v38 = vld [vmem:[%s1685_s5 + $0x60] sm:$0xff]  ;;  %p1183_p13 = pnand %p1182_p12, %p1323_p4 }
  0x20   : > { %1032 = vmatmul.msk.f32.vlgmr.msra.gmra.mxu0 %vm397_vm0, %v341_v13  ;;  %1040 = vmatmul.msk.f32.vlgmr.msra.gmra.mxu1 %vm397_vm0, %v341_v13  ;;  %v581_v35 = vld [vmem:[%s1685_s5 + $0x68] sm:$0xff]  ;;  %v347_v37 = vld [vmem:[%s1682_s2 + $0x30] sm:$0xff]  ;;  %v348_v39 = vld [vmem:[%s1682_s2 + $0x38] sm:$0xff] }
  0x21   : > { %369 = vperm.xlu2 %1164, %v351_v18   ;;  %v583_v40 = vld [vmem:[%s1685_s5 + $0x78] sm:$0xff]  ;;  %p1184_p0 = pneg %p1183_p13 }
  0x26   : > { %359 = vperm.xlu1 %1163, %v349_v15   ;;  %364 = vperm.xlu0 %1162, %v350_v16  }
  0x28   : > { %1033 = vmatmul.msk.f32.gmra.mxu0 %vm397_vm0, %v342_v17  ;;  %1041 = vmatmul.msk.f32.gmra.mxu1 %vm397_vm0, %v342_v17 }
  0x29   : > { %586 = vperm.xlu2 %1164, %v568_v22  }
  0x2e   : > { %591 = vperm.xlu0 %1162, %v569_v19   ;;  %596 = vperm.xlu1 %1163, %v570_v20  }
  0x30   : > { %1034 = vmatmul.msk.f32.gmra.mxu0 %vm397_vm0, %v343_v21  ;;  %1042 = vmatmul.msk.f32.gmra.mxu1 %vm397_vm0, %v343_v21 }
  0x31   : > { %601 = vperm.xlu2 %1164, %v571_v26  }
  0x36   : > { %606 = vperm.xlu0 %1162, %v572_v23   ;;  %611 = vperm.xlu1 %1163, %v573_v24  }
  0x38   : > { %1035 = vmatmul.msk.f32.gmra.mxu0 %vm397_vm0, %v344_v25  ;;  %1043 = vmatmul.msk.f32.gmra.mxu1 %vm397_vm0, %v344_v25 }
  0x39   : > { %616 = vperm.xlu2 %1164, %v574_v30  }
  0x3e   : > { %621 = vperm.xlu0 %1162, %v575_v27   ;;  %626 = vperm.xlu1 %1163, %v576_v28  }
  0x40   : > { %1036 = vmatmul.msk.f32.gmra.mxu0 %vm397_vm0, %v345_v29  ;;  %1044 = vmatmul.msk.f32.gmra.mxu1 %vm397_vm0, %v345_v29 }
  0x41   : > { %631 = vperm.xlu2 %1164, %v577_v34  }
  0x46   : > { %636 = vperm.xlu0 %1162, %v578_v31   ;;  %641 = vperm.xlu1 %1163, %v579_v32  }
  0x48   : > { %1037 = vmatmul.msk.f32.gmra.mxu0 %vm397_vm0, %v346_v33  ;;  %1045 = vmatmul.msk.f32.gmra.mxu1 %vm397_vm0, %v346_v33 }
  0x49   : > { %646 = vperm.xlu2 %1164, %v580_v38  }
  0x4e   : > { %651 = vperm.xlu0 %1162, %v581_v35   ;;  %656 = vperm.xlu1 %1163, %v582_v36  }
  0x50   : > { %1038 = vmatmul.msk.f32.gmra.mxu0 %vm397_vm0, %v347_v37  ;;  %1046 = vmatmul.msk.f32.gmra.mxu1 %vm397_vm0, %v347_v37 }
  0x51   : > { %661 = vperm.xlu2 %1164, %v583_v40  }
  0x58   : > { %1039 = vmatmul.msk.f32.gmra.mxu0 %vm397_vm0, %v348_v39  ;;  %1047 = vmatmul.msk.f32.gmra.mxu1 %vm397_vm0, %v348_v39 }
  0x72   : > { %v375_v58 = vpop.permute.xlu2 %374 }
  0x7b   : > { %v370_v15 = vpop.permute.xlu2 %369 }
  0x88   : > { %v395_v53 = vpop.permute.xlu0 %394  ;;  %v385_v54 = vpop.permute.xlu1 %384 }
  0x90   : > { %v390_v57 = vpop.permute.xlu0 %389  ;;  %v380_v59 = vpop.permute.xlu1 %379 }
  0x98   : > { %v365_v14 = vpop.permute.xlu0 %364  ;;  %v360_v21 = vpop.permute.xlu1 %359 }
  0x9d   : > { %v1458_v41 = vpop.f32.mrf.mxu0  ;;  %v1460_v42 = vpop.f32.mrf.mxu1 }
  0x9e   : > { %v440_v31 = vadd.f32 %v1458_v41, %v360_v21  ;;  %v481_v34 = vadd.f32 %v1460_v42, %v360_v21 }
  0xa0   : > { %v520_v42 = vmul.f32 0.1, %v440_v31  ;;  %vm504_vm15 = vcmp.ge.f32.partialorder %v440_v31, 0.0  ;;  %vm505_vm0 = vcmp.ge.f32.partialorder %v481_v34, 0.0 }
  0xa5   : > { %v442_v43 = vpop.f32.mrf.mxu0  ;;  %v1462_v44 = vpop.f32.mrf.mxu1 }
  0xa6   : > { %v443_v25 = vadd.f32 %v442_v43, %v365_v14  ;;  %v484_v28 = vadd.f32 %v1462_v44, %v365_v14  ;;  %v521_v44 = vmul.f32 0.1, %v481_v34 }
  0xa8   : > { %v522_v38 = vmul.f32 0.1, %v443_v25  ;;  %vm506_vm13 = vcmp.ge.f32.partialorder %v443_v25, 0.0  ;;  %v523_v40 = vmul.f32 0.1, %v484_v28  ;;  %vm507_vm14 = vcmp.ge.f32.partialorder %v484_v28, 0.0 }
  0xad   : > { %v445_v45 = vpop.f32.mrf.mxu0  ;;  %v486_v46 = vpop.f32.mrf.mxu1 }
  0xae   : > { %v446_v18 = vadd.f32 %v445_v45, %v370_v15  ;;  %v487_v22 = vadd.f32 %v486_v46, %v370_v15  ;;  %v538_v45 = vsel %vm506_vm13, %v443_v25, %v522_v38  ;;  %v539_v46 = vsel %vm507_vm14, %v484_v28, %v523_v40  ;;  %v326_v25 = vld [vmem:[%s1578_s8 + $0x8] sm:$0xff] }
  0xb0   : > { %v524_v33 = vmul.f32 0.1, %v446_v18  ;;  %vm508_vm11 = vcmp.ge.f32.partialorder %v446_v18, 0.0  ;;  %v525_v36 = vmul.f32 0.1, %v487_v22  ;;  %vm509_vm12 = vcmp.ge.f32.partialorder %v487_v22, 0.0 }
  0xb2   : > { %v540_v41 = vsel %vm508_vm11, %v446_v18, %v524_v33  ;;  %v541_v43 = vsel %vm509_vm12, %v487_v22, %v525_v36 }
  0xb5   : > { %v448_v47 = vpop.f32.mrf.mxu0  ;;  %v489_v48 = vpop.f32.mrf.mxu1 }
  0xb6   : > { %v449_v8 = vadd.f32 %v448_v47, %v375_v58  ;;  %v490_v16 = vadd.f32 %v489_v48, %v375_v58  ;;  %v536_v47 = vsel %vm504_vm15, %v440_v31, %v520_v42  ;;  %v552_v48 = vld [vmem:[%s1684_s4] sm:$0xff]  ;;  %v561_v58 = vld [vmem:[%s1684_s4 + $0x48] sm:$0xff] }
  0xb8   : > { %v526_v27 = vmul.f32 0.1, %v449_v8  ;;  %vm510_vm9 = vcmp.ge.f32.partialorder %v449_v8, 0.0  ;;  %v527_v30 = vmul.f32 0.1, %v490_v16  ;;  %vm511_vm10 = vcmp.ge.f32.partialorder %v490_v16, 0.0 }
  0xba   : > { %v542_v37 = vsel %vm510_vm9, %v449_v8, %v526_v27  ;;  %v543_v39 = vsel %vm511_vm10, %v490_v16, %v527_v30 }
  0xbd   : > { %v451_v49 = vpop.f32.mrf.mxu0  ;;  %v492_v50 = vpop.f32.mrf.mxu1 }
  0xbe   : > { %v452_v3 = vadd.f32 %v451_v49, %v380_v59  ;;  %v493_v9 = vadd.f32 %v492_v50, %v380_v59  ;;  %v556_v49 = vld [vmem:[%s1684_s4 + $0x20] sm:$0xff]  ;;  %v537_v50 = vsel %vm505_vm0, %v481_v34, %v521_v44  ;;  %v562_v59 = vld [vmem:[%s1684_s4 + $0x50] sm:$0xff] }
  0xc0   : > { %v528_v20 = vmul.f32 0.1, %v452_v3  ;;  %vm512_vm7 = vcmp.ge.f32.partialorder %v452_v3, 0.0  ;;  %v529_v24 = vmul.f32 0.1, %v493_v9  ;;  %vm513_vm8 = vcmp.ge.f32.partialorder %v493_v9, 0.0 }
  0xc2   : > { %v544_v32 = vsel %vm512_vm7, %v452_v3, %v528_v20  ;;  %v545_v35 = vsel %vm513_vm8, %v493_v9, %v529_v24 }
  0xc5   : > { %v454_v51 = vpop.f32.mrf.mxu0  ;;  %v495_v52 = vpop.f32.mrf.mxu1 }
  0xc6   : > { %v455_v0 = vadd.f32 %v454_v51, %v385_v54  ;;  %v496_v4 = vadd.f32 %v495_v52, %v385_v54  ;;  %v553_v51 = vld [vmem:[%s1684_s4 + $0x8] sm:$0xff]  ;;  %v558_v54 = vld [vmem:[%s1684_s4 + $0x30] sm:$0xff] }
  0xc7   : > { %v557_v52 = vld [vmem:[%s1684_s4 + $0x28] sm:$0xff] }
  0xc8   : > { %v530_v13 = vmul.f32 0.1, %v455_v0  ;;  %vm514_vm5 = vcmp.ge.f32.partialorder %v455_v0, 0.0  ;;  %v531_v17 = vmul.f32 0.1, %v496_v4  ;;  %vm515_vm6 = vcmp.ge.f32.partialorder %v496_v4, 0.0 }
  0xca   : > { %v546_v26 = vsel %vm514_vm5, %v455_v0, %v530_v13  ;;  %v547_v29 = vsel %vm515_vm6, %v496_v4, %v531_v17  ;;  %v567_v0 = vld [vmem:[%s1684_s4 + $0x78] sm:$0xff] }
  0xcd   : > { %v457_v55 = vpop.f32.mrf.mxu0  ;;  %v498_v56 = vpop.f32.mrf.mxu1 }
  0xce   : > { %v458_v60 = vadd.f32 %v457_v55, %v390_v57  ;;  %v499_v61 = vadd.f32 %v498_v56, %v390_v57  ;;  %v555_v55 = vld [vmem:[%s1684_s4 + $0x18] sm:$0xff]  ;;  %v560_v57 = vld [vmem:[%s1684_s4 + $0x40] sm:$0xff] }
  0xcf   : > { %v559_v56 = vld [vmem:[%s1684_s4 + $0x38] sm:$0xff] }
  0xd0   : > { %v532_v5 = vmul.f32 0.1, %v458_v60  ;;  %vm516_vm3 = vcmp.ge.f32.partialorder %v458_v60, 0.0  ;;  %v533_v10 = vmul.f32 0.1, %v499_v61  ;;  %vm517_vm4 = vcmp.ge.f32.partialorder %v499_v61, 0.0 }
  0xd2   : > { %v548_v19 = vsel %vm516_vm3, %v458_v60, %v532_v5  ;;  %v549_v23 = vsel %vm517_vm4, %v499_v61, %v533_v10  ;;  %v563_v60 = vld [vmem:[%s1684_s4 + $0x58] sm:$0xff]  ;;  %v564_v61 = vld [vmem:[%s1684_s4 + $0x60] sm:$0xff]  ;;  %v587_v5 = vpop.permute.xlu2 %586 }
  0xd5   : > { %v460_v62 = vpop.f32.mrf.mxu0  ;;  %v501_v63 = vpop.f32.mrf.mxu1 }
  0xd6   : > { %v461_v1 = vadd.f32 %v460_v62, %v395_v53  ;;  %v502_v2 = vadd.f32 %v501_v63, %v395_v53  ;;  %v554_v53 = vld [vmem:[%s1684_s4 + $0x10] sm:$0xff]  ;;  %v565_v62 = vld [vmem:[%s1684_s4 + $0x68] sm:$0xff] }
  0xd7   : > { %v566_v63 = vld [vmem:[%s1684_s4 + $0x70] sm:$0xff] }
  0xd8   : > { %vm518_vm1 = vcmp.ge.f32.partialorder %v461_v1, 0.0  ;;  %v534_v6 = vmul.f32 0.1, %v461_v1  ;;  %vm519_vm2 = vcmp.ge.f32.partialorder %v502_v2, 0.0  ;;  %v535_v7 = vmul.f32 0.1, %v502_v2 }
  0xda   : > { %v550_v11 = vsel %vm518_vm1, %v461_v1, %v534_v6  ;;  %v551_v12 = vsel %vm519_vm2, %v502_v2, %v535_v7  ;;  %vm664_vm1 = vcmask 523264   ;;  %v597_v6 = vpop.permute.xlu1 %596 }
  0xdb   : > { %721 = vmatpush.msrb.mxu0 %v550_v11  ;;  %1088 = vmatpush.msra.mxu2 %v550_v11  ;;  %v592_v11 = vpop.permute.xlu0 %591 }
  0xdc   : > { %786 = vmatpush.msrb.mxu1 %v551_v12  ;;  %1096 = vmatpush.msra.mxu3 %v551_v12  ;;  %v1566_v12 = vpop.permute.xlu2 %601 }
  0xdd   : > { %722 = vmatpush.msrb.mxu0 %v548_v19  ;;  %1089 = vmatpush.msra.mxu2 %v548_v19 }
  0xde   : > { %787 = vmatpush.msrb.mxu1 %v549_v23  ;;  %1097 = vmatpush.msra.mxu3 %v549_v23  ;;  %v325_v23 = vld [vmem:[%s1578_s8] sm:$0xff] }
  0xdf   : > { %723 = vmatpush.msrb.mxu0 %v546_v26  ;;  %1090 = vmatpush.msra.mxu2 %v546_v26 }
  0xe0   : > { %788 = vmatpush.msrb.mxu1 %v547_v29  ;;  %1098 = vmatpush.msra.mxu3 %v547_v29 }
  0xe1   : > { %724 = vmatpush.msrb.mxu0 %v544_v32  ;;  %1091 = vmatpush.msra.mxu2 %v544_v32 }
  0xe2   : > { %789 = vmatpush.msrb.mxu1 %v545_v35  ;;  %1099 = vmatpush.msra.mxu3 %v545_v35  ;;  %v1568_v13 = vpop.permute.xlu1 %611 }
  0xe3   : > { %725 = vmatpush.msrb.mxu0 %v542_v37  ;;  %1092 = vmatpush.msra.mxu2 %v542_v37  ;;  %v1580_v20 = vpop.permute.xlu0 %606 }
  0xe4   : > { %790 = vmatpush.msrb.mxu1 %v543_v39  ;;  %1100 = vmatpush.msra.mxu3 %v543_v39  ;;  %v1583_v22 = vpop.permute.xlu2 %616 }
  0xe5   : > { %726 = vmatpush.msrb.mxu0 %v540_v41  ;;  %1093 = vmatpush.msra.mxu2 %v540_v41  ;;  %v327_v41 = vld [vmem:[%s1578_s8 + $0x10] sm:$0xff] }
  0xe6   : > { %791 = vmatpush.msrb.mxu1 %v541_v43  ;;  %1101 = vmatpush.msra.mxu3 %v541_v43  ;;  %v328_v43 = vld [vmem:[%s1578_s8 + $0x18] sm:$0xff] }
  0xe7   : > { %727 = vmatpush.msrb.mxu0 %v538_v45  ;;  %1094 = vmatpush.msra.mxu2 %v538_v45 }
  0xe8   : > { %792 = vmatpush.msrb.mxu1 %v539_v46  ;;  %1102 = vmatpush.msra.mxu3 %v539_v46 }
  0xe9   : > { %728 = vmatpush.msrb.mxu0 %v536_v47  ;;  %1095 = vmatpush.msra.mxu2 %v536_v47 }
  0xea   : > { %793 = vmatpush.msrb.mxu1 %v537_v50  ;;  %1103 = vmatpush.msra.mxu3 %v537_v50  ;;  %v627_v26 = vpop.permute.xlu1 %626 }
  0xeb   : > { %1048 = vmatmul.msk.f32.vlgmr.msrb.gmra.mxu0 %vm664_vm1, %v552_v48  ;;  %1052 = vmatmul.msk.f32.vlgmr.msra.gmra.mxu2 %vm664_vm1, %v556_v49  ;;  %v1592_v40 = vpop.permute.xlu0 %621 }
  0xec   : > { %1064 = vmatmul.msk.f32.vlgmr.msrb.gmra.mxu1 %vm664_vm1, %v552_v48  ;;  %1068 = vmatmul.msk.f32.vlgmr.msra.gmra.mxu3 %vm664_vm1, %v556_v49  ;;  %v632_v44 = vpop.permute.xlu2 %631 }
  0xf3   : > { %1049 = vmatmul.msk.f32.gmra.mxu0 %vm664_vm1, %v553_v51  ;;  %1053 = vmatmul.msk.f32.gmra.mxu2 %vm664_vm1, %v557_v52 }
  0xf4   : > { %1065 = vmatmul.msk.f32.gmra.mxu1 %vm664_vm1, %v553_v51  ;;  %1069 = vmatmul.msk.f32.gmra.mxu3 %vm664_vm1, %v557_v52 }
  0xfb   : > { %1050 = vmatmul.msk.f32.gmra.mxu0 %vm664_vm1, %v554_v53  ;;  %1054 = vmatmul.msk.f32.gmra.mxu2 %vm664_vm1, %v558_v54 }
  0xfc   : > { %1066 = vmatmul.msk.f32.gmra.mxu1 %vm664_vm1, %v554_v53  ;;  %1070 = vmatmul.msk.f32.gmra.mxu3 %vm664_vm1, %v558_v54 }
 0x103   : > { %1051 = vmatmul.msk.f32.gmra.mxu0 %vm664_vm1, %v555_v55  ;;  %1055 = vmatmul.msk.f32.gmra.mxu2 %vm664_vm1, %v559_v56 }
 0x104   : > { %1067 = vmatmul.msk.f32.gmra.mxu1 %vm664_vm1, %v555_v55  ;;  %1071 = vmatmul.msk.f32.gmra.mxu3 %vm664_vm1, %v559_v56  ;;  %v329_v56 = vld [vmem:[%s1578_s8 + $0x20] sm:$0xff] }
 0x10b   : > { %1056 = vmatmul.msk.f32.gmra.mxu2 %vm664_vm1, %v560_v57 }
 0x10c   : > { %1072 = vmatmul.msk.f32.gmra.mxu3 %vm664_vm1, %v560_v57 }
 0x113   : > { %1057 = vmatmul.msk.f32.gmra.mxu2 %vm664_vm1, %v561_v58 }
 0x114   : > { %1073 = vmatmul.msk.f32.gmra.mxu3 %vm664_vm1, %v561_v58 }
 0x11b   : > { %1058 = vmatmul.msk.f32.gmra.mxu2 %vm664_vm1, %v562_v59 }
 0x11c   : > { %1074 = vmatmul.msk.f32.gmra.mxu3 %vm664_vm1, %v562_v59  ;;  %v330_v59 = vld [vmem:[%s1578_s8 + $0x28] sm:$0xff] }
 0x123   : > { %1059 = vmatmul.msk.f32.gmra.mxu2 %vm664_vm1, %v563_v60 }
 0x124   : > { %1075 = vmatmul.msk.f32.gmra.mxu3 %vm664_vm1, %v563_v60 }
 0x12b   : > { %1060 = vmatmul.msk.f32.gmra.mxu2 %vm664_vm1, %v564_v61 }
 0x12c   : > { %1076 = vmatmul.msk.f32.gmra.mxu3 %vm664_vm1, %v564_v61  ;;  %v637_v61 = vpop.permute.xlu0 %636 }
 0x133   : > { %1061 = vmatmul.msk.f32.gmra.mxu2 %vm664_vm1, %v565_v62 }
 0x134   : > { %1077 = vmatmul.msk.f32.gmra.mxu3 %vm664_vm1, %v565_v62 }
 0x13b   : > { %1062 = vmatmul.msk.f32.gmra.mxu2 %vm664_vm1, %v566_v63 }
 0x13c   : > { %1078 = vmatmul.msk.f32.gmra.mxu3 %vm664_vm1, %v566_v63 }
 0x143   : > { %1063 = vmatmul.msk.f32.gmra.mxu2 %vm664_vm1, %v567_v0 }
 0x144   : > { %1079 = vmatmul.msk.f32.gmra.mxu3 %vm664_vm1, %v567_v0 }
 0x168   : > { %v730_v7 = vpop.f32.mrf.mxu0 }
 0x169   : > { %v795_v9 = vpop.f32.mrf.mxu1  ;;  %v731_v15 = vadd.f32 %v730_v7, %v587_v5 }
 0x16a   : > { %v796_v17 = vadd.f32 %v795_v9, %v587_v5 }
 0x16b   : > { %v843_v21 = vadd.f32 1.0, %v731_v15 }
 0x16c   : > { %v844_v24 = vadd.f32 1.0, %v796_v17 }
 0x16d   : > { %v859_v28 = vmul.f32 %v843_v21, %v325_v23  ;;  %v332_v23 = vld [vmem:[%s1578_s8 + $0x38] sm:$0xff] }
 0x16e   : > { %v1554_v1 = vpop.f32.mrf.mxu2  ;;  %v860_v32 = vmul.f32 %v844_v24, %v326_v25  ;;  %v642_v24 = vpop.permute.xlu1 %641 }
 0x16f   : > { %v1556_v2 = vpop.f32.mrf.mxu3 }
 0x170   : > { %v733_v18 = vpop.f32.mrf.mxu0 }
 0x171   : > { %v798_v19 = vpop.f32.mrf.mxu1  ;;  %v734_v29 = vadd.f32 %v733_v18, %v592_v11 }
 0x172   : > { %v799_v33 = vadd.f32 %v798_v19, %v592_v11  ;;  %v331_v19 = vld [vmem:[%s1578_s8 + $0x30] sm:$0xff] }
 0x173   : > { %v845_v38 = vadd.f32 1.0, %v734_v29  ;;  %v808_v29 = vadd.f32 %v1556_v2, %v1580_v20 }
 0x174   : > { %v846_v42 = vadd.f32 1.0, %v799_v33 }
 0x175   : > { %v861_v46 = vmul.f32 %v845_v38, %v327_v41 }
 0x176   : > { %v1558_v3 = vpop.f32.mrf.mxu2  ;;  %v862_v50 = vmul.f32 %v846_v42, %v328_v43 }
 0x177   : > { %v1560_v4 = vpop.f32.mrf.mxu3  ;;  %v746_v2 = vadd.f32 %v1558_v3, %v1568_v13 }
 0x178   : > { %v736_v36 = vpop.f32.mrf.mxu0  ;;  %v811_v43 = vadd.f32 %v1560_v4, %v1568_v13 }
 0x179   : > { %v801_v39 = vpop.f32.mrf.mxu1  ;;  %v737_v47 = vadd.f32 %v736_v36, %v597_v6  ;;  %v852_v36 = vadd.f32 1.0, %v808_v29 }
 0x17a   : > { %v802_v51 = vadd.f32 %v801_v39, %v597_v6 }
 0x17b   : > { %v847_v55 = vadd.f32 1.0, %v737_v47  ;;  %v853_v47 = vadd.f32 1.0, %v746_v2 }
 0x17c   : > { %v848_v57 = vadd.f32 1.0, %v802_v51  ;;  %v652_v51 = vpop.permute.xlu0 %651 }
 0x17d   : > { %v863_v63 = vmul.f32 %v847_v55, %v329_v56 }
 0x17e   : > { %v1562_v8 = vpop.f32.mrf.mxu2  ;;  %v864_v7 = vmul.f32 %v848_v57, %v330_v59 }
 0x17f   : > { %v1564_v10 = vpop.f32.mrf.mxu3 }
 0x180   : > { %v739_v58 = vpop.f32.mrf.mxu0  ;;  %v814_v55 = vadd.f32 %v1564_v10, %v1583_v22 }
 0x181   : > { %v804_v60 = vpop.f32.mrf.mxu1  ;;  %v740_v0 = vadd.f32 %v739_v58, %v1566_v12 }
 0x182   : > { %v805_v9 = vadd.f32 %v804_v60, %v1566_v12  ;;  %v337_v60 = vld [vmem:[%s1578_s8 + $0x60] sm:$0xff] }
 0x183   : > { %v849_v18 = vadd.f32 1.0, %v740_v0 }
 0x184   : > { %v850_v21 = vadd.f32 1.0, %v805_v9 }
 0x186   : > { %v1571_v14 = vpop.f32.mrf.mxu2 }
 0x187   : > { %v1573_v16 = vpop.f32.mrf.mxu3  ;;  %v752_v10 = vadd.f32 %v1571_v14, %v1592_v40  ;;  %v340_v14 = vld [vmem:[%s1578_s8 + $0x78] sm:$0xff] }
 0x18e   : > { %v754_v27 = vpop.f32.mrf.mxu2 }
 0x18f   : > { %v755_v30 = vadd.f32 %v754_v27, %v627_v26  ;;  %v819_v31 = vpop.f32.mrf.mxu3  ;;  %v865_v27 = vmul.f32 %v849_v18, %v331_v19  ;;  %v339_v18 = vld [vmem:[%s1578_s8 + $0x70] sm:$0xff] }
 0x190   : > { %v820_v34 = vadd.f32 %v819_v31, %v627_v26  ;;  %v743_v26 = vadd.f32 %v1554_v1, %v1580_v20  ;;  %v647_v1 = vpop.permute.xlu2 %646 }
 0x191   : > { %v875_v35 = vadd.f32 %v859_v28, %v755_v30  ;;  %v866_v30 = vmul.f32 %v850_v21, %v332_v23 }
 0x192   : > { %v876_v37 = vadd.f32 %v860_v32, %v820_v34  ;;  %v851_v34 = vadd.f32 1.0, %v743_v26 }
 0x193   : > { %891 = vst [vmem:[%s1589_s12] sm:$0xff] %v875_v35  ;;  %v333_v35 = vld [vmem:[%s1578_s8 + $0x40] sm:$0xff] }
 0x194   : > { %892 = vst [vmem:[%s1589_s12 + $0x8] sm:$0xff] %v876_v37  ;;  %v334_v37 = vld [vmem:[%s1578_s8 + $0x48] sm:$0xff]  ;;  %v867_v39 = vmul.f32 %v851_v34, %v333_v35 }
 0x195   : > { %v868_v42 = vmul.f32 %v852_v36, %v334_v37 }
 0x196   : > { %v757_v45 = vpop.f32.mrf.mxu2 }
 0x197   : > { %v758_v48 = vadd.f32 %v757_v45, %v632_v44  ;;  %v822_v49 = vpop.f32.mrf.mxu3 }
 0x198   : > { %v823_v52 = vadd.f32 %v822_v49, %v632_v44  ;;  %v854_v49 = vadd.f32 1.0, %v811_v43  ;;  %v662_v21 = vpop.permute.xlu2 %661 }
 0x199   : > { %v877_v53 = vadd.f32 %v861_v46, %v758_v48  ;;  %v335_v48 = vld [vmem:[%s1578_s8 + $0x50] sm:$0xff] }
 0x19a   : > { %v878_v54 = vadd.f32 %v862_v50, %v823_v52  ;;  %v336_v50 = vld [vmem:[%s1578_s8 + $0x58] sm:$0xff]  ;;  %v869_v52 = vmul.f32 %v853_v47, %v335_v48 }
 0x19b   : > { %893 = vst [vmem:[%s1589_s12 + $0x10] sm:$0xff] %v877_v53  ;;  %v749_v53 = vadd.f32 %v1562_v8, %v1583_v22 }
 0x19c   : > { %894 = vst [vmem:[%s1589_s12 + $0x18] sm:$0xff] %v878_v54  ;;  %v870_v54 = vmul.f32 %v854_v49, %v336_v50 }
 0x19d   : > { %v855_v59 = vadd.f32 1.0, %v749_v53 }
 0x19e   : > { %v760_v62 = vpop.f32.mrf.mxu2 }
 0x19f   : > { %v761_v5 = vadd.f32 %v760_v62, %v637_v61  ;;  %v825_v6 = vpop.f32.mrf.mxu3  ;;  %v338_v62 = vld [vmem:[%s1578_s8 + $0x68] sm:$0xff]  ;;  %v871_v0 = vmul.f32 %v855_v59, %v337_v60  ;;  %s1185_s8 = scalar_lea.hbm %s1686_s6, 256 }
 0x1a0   : > { %v826_v11 = vadd.f32 %v825_v6, %v637_v61  ;;  %v856_v61 = vadd.f32 1.0, %v814_v55  ;;  %p1187_p2 = scmp.lt.s32.totalorder %s1185_s8, %s1181_s27 }
 0x1a1   : > { %v879_v15 = vadd.f32 %v863_v63, %v761_v5  ;;  %v657_v63 = vpop.permute.xlu1 %656 }
 0x1a2   : > { %v880_v17 = vadd.f32 %v864_v7, %v826_v11  ;;  %v872_v6 = vmul.f32 %v856_v61, %v338_v62  ;;  %v817_v7 = vadd.f32 %v1573_v16, %v1592_v40  ;;  %p1188_p3 = por %p1187_p2, %p1186_p1 }
 0x1a3   : > { %895 = vst [vmem:[%s1589_s12 + $0x20] sm:$0xff] %v879_v15 }
 0x1a4   : > { %896 = vst [vmem:[%s1589_s12 + $0x28] sm:$0xff] %v880_v17  ;;  %v857_v17 = vadd.f32 1.0, %v752_v10  ;;  %v858_v19 = vadd.f32 1.0, %v817_v7  ;;  %p1189_p5 = pnand %p1188_p3, %p1184_p0 }
 0x1a6   : > { %v763_v25 = vpop.f32.mrf.mxu2  ;;  %v873_v16 = vmul.f32 %v857_v17, %v339_v18 }
 0x1a7   : > { %v764_v12 = vadd.f32 %v763_v25, %v642_v24  ;;  %v828_v28 = vpop.f32.mrf.mxu3  ;;  %v874_v25 = vmul.f32 %v858_v19, %v340_v14 }
 0x1a8   : > { %v829_v31 = vadd.f32 %v828_v28, %v642_v24 }
 0x1a9   : > { %v881_v32 = vadd.f32 %v865_v27, %v764_v12 }
 0x1aa   : > { %v882_v33 = vadd.f32 %v866_v30, %v829_v31 }
 0x1ab   : > { %897 = vst [vmem:[%s1589_s12 + $0x30] sm:$0xff] %v881_v32 }
 0x1ac   : > { %898 = vst [vmem:[%s1589_s12 + $0x38] sm:$0xff] %v882_v33 }
 0x1ae   : > { %v766_v38 = vpop.f32.mrf.mxu2 }
 0x1af   : > { %v767_v20 = vadd.f32 %v766_v38, %v647_v1  ;;  %v831_v41 = vpop.f32.mrf.mxu3 }
 0x1b0   : > { %v832_v44 = vadd.f32 %v831_v41, %v647_v1 }
 0x1b1   : > { %v883_v45 = vadd.f32 %v867_v39, %v767_v20 }
 0x1b2   : > { %v884_v46 = vadd.f32 %v868_v42, %v832_v44 }
 0x1b3   : > { %899 = vst [vmem:[%s1589_s12 + $0x40] sm:$0xff] %v883_v45 }
 0x1b4   : > { %900 = vst [vmem:[%s1589_s12 + $0x48] sm:$0xff] %v884_v46 }
 0x1b6   : > { %v769_v3 = vpop.f32.mrf.mxu2 }
 0x1b7   : > { %v770_v4 = vadd.f32 %v769_v3, %v652_v51  ;;  %v834_v13 = vpop.f32.mrf.mxu3 }
 0x1b8   : > { %v835_v56 = vadd.f32 %v834_v13, %v652_v51 }
 0x1b9   : > { %v885_v57 = vadd.f32 %v869_v52, %v770_v4 }
 0x1ba   : > { %v886_v58 = vadd.f32 %v870_v54, %v835_v56 }
 0x1bb   : > { %901 = vst [vmem:[%s1589_s12 + $0x50] sm:$0xff] %v885_v57 }
 0x1bc   : > { %902 = vst [vmem:[%s1589_s12 + $0x58] sm:$0xff] %v886_v58 }
 0x1be   : > { %v772_v8 = vpop.f32.mrf.mxu2 }
 0x1bf   : > { %v773_v22 = vadd.f32 %v772_v8, %v657_v63  ;;  %v837_v5 = vpop.f32.mrf.mxu3 }
 0x1c0   : > { %v838_v9 = vadd.f32 %v837_v5, %v657_v63 }
 0x1c1   : > { %v887_v11 = vadd.f32 %v871_v0, %v773_v22 }
 0x1c2   : > { %v888_v15 = vadd.f32 %v872_v6, %v838_v9 }
 0x1c3   : > { %903 = vst [vmem:[%s1589_s12 + $0x60] sm:$0xff] %v887_v11 }
 0x1c4   : > { %904 = vst [vmem:[%s1589_s12 + $0x68] sm:$0xff] %v888_v15 }
 0x1c6   : > { %v775_v23 = vpop.f32.mrf.mxu2 }
 0x1c7   : > { %v776_v40 = vadd.f32 %v775_v23, %v662_v21  ;;  %v840_v24 = vpop.f32.mrf.mxu3 }
 0x1c8   : > { %v841_v26 = vadd.f32 %v840_v24, %v662_v21 }
 0x1c9   : > { %v889_v27 = vadd.f32 %v873_v16, %v776_v40 }
 0x1ca   : > { %v890_v12 = vadd.f32 %v874_v25, %v841_v26 }
 0x1cb   : > { %905 = vst [vmem:[%s1589_s12 + $0x70] sm:$0xff] %v889_v27 }
 0x1cc   : > { %906 = vst [vmem:[%s1589_s12 + $0x78] sm:$0xff] %v890_v12 }
 0x1cd   : > { %1192 = shalt.err (!%p1189_p5)
}
 0x1ce   : > { %s1246_s11 = smov 256   ;;  %s1247_s12 = smov 16  }
 0x1cf   : > { %1104 = dma.vmem_to_hbm [thread:$0]  (%p1323_p4), %s923_s18, 2048, %s925_s19, %s908_s24, %s1246_s11, %s1246_s11, %s1247_s12  }
 0x1d0 PF: > { %p1110_p6 = scmp.ge.s32.totalorder %s1243_s26, 2  ;;  %s939_s14 = sand.u32 1, %s1223_s21  }
 0x1d1   : > { %s940_s16 = scalar_lea.sflag [#allocation3], %s939_s14 }
 0x1d2   : > { %p1107_p7 = pnand %p1110_p6, %p1330_p8 }
 0x1d4   : > { %p1108_p9 = pneg %p1107_p7 }
 0x1d6   : > { %1218 = dma.done.wait (%p1108_p9), %s940_s16, 2048  }
 0x1d7   : > { %1220 = vsyncadd (%p1108_p9), %s940_s16, 4294965248  ;;  %s19_s26 = sadd.s32 1, %s1243_s26   ;;  %s1689_s21 = smov %s1227_s22 }
 0x1d8   : > { %p16_p10 = scmp.ge.s32.totalorder %s19_s26, 4   ;;  %s1690_s22 = smov %s1231_s23 }
 0x1d9   : > { %s1691_s23 = smov %s1336_s10  ;;  %s1692_s24 = smov %s1239_s25 }
 0x1da   : > { %s1693_s25 = smov %s1695_s29  ;;  %18 = sbr.rel (!%p16_p10) target bundleno = 4 (0x4), region = 82 }
 0x1df   :  { %946 = vsyncpa [#allocation3], 1 }
 0x1e0   :  { %948 = vsyncpa [#allocation3 + $0x1], 1 }

</bundles_post_ra>
